<compile_context>
chip_gen: v6e
topology: v6e:2x2x1
jax: 0.10.0
libtpu: 0.0.40
codegen_flags: <defaults>
</compile_context>

<pallas_src>
import numpy as np
import jax
import jax.numpy as jnp
from jax import lax
from jax.experimental import pallas as pl
from jax.experimental.pallas import tpu as pltpu


def _round_up(x, m):
    return -(-x // m) * m


# ---------------------------------------------------------------------------
# Phase 1 kernel: input projection over all time steps (no recurrence).
#   x_ref: (tm, D)    flattened (time*batch) rows
#   w_ref: (D, 4H)    W_ih^T
#   o_ref: (tm, 4H)   precomputed gate inputs
# ---------------------------------------------------------------------------
def _proj_kernel(x_ref, w_ref, o_ref):
    o_ref[...] = jnp.dot(
        x_ref[...], w_ref[...], preferred_element_type=jnp.float32
    ).astype(o_ref.dtype)


# ---------------------------------------------------------------------------
# Phase 2 kernel: LSTM recurrence over one time chunk.
#   gx_ref:  (Tc, N, 4H)  precomputed x_t @ W_ih^T for this chunk
#   whh_ref: (H, 4H)      W_hh^T (constant across grid steps)
#   o_ref:   (Tc, N, H)   hidden states for this chunk
#   h_ref:   (N, H)       hidden carry (VMEM scratch, persists across chunks)
#   c_ref:   (N, H)       cell   carry (VMEM scratch, persists across chunks)
# ---------------------------------------------------------------------------
def _lstm_recurrence_kernel(gx_ref, whh_ref, o_ref, h_ref, c_ref):
    chunk = pl.program_id(0)
    Tc = gx_ref.shape[0]
    H = h_ref.shape[-1]

    @pl.when(chunk == 0)
    def _():
        h_ref[...] = jnp.zeros_like(h_ref)
        c_ref[...] = jnp.zeros_like(c_ref)

    # Hoist the (constant) recurrent weight load out of the loop.
    whh = whh_ref[...]

    def step(t, carry):
        h, c = carry
        # Only the recurrent matmul is on the serial critical path.
        gates = gx_ref[t] + jnp.dot(h, whh, preferred_element_type=jnp.float32)

        # PyTorch gate order: i, f, g, o.  (For H that is a multiple of 128
        # these slices are whole-vreg aligned; at H=32 they are lane slices.)
        i_g = jax.nn.sigmoid(gates[:, 0 * H:1 * H])
        f_g = jax.nn.sigmoid(gates[:, 1 * H:2 * H])
        g_g = jnp.tanh(gates[:, 2 * H:3 * H])
        o_g = jax.nn.sigmoid(gates[:, 3 * H:4 * H])

        c_new = f_g * c + i_g * g_g
        h_new = o_g * jnp.tanh(c_new)

        o_ref[t] = h_new.astype(o_ref.dtype)
        return h_new, c_new

    # Unrolled loop gives the LLO scheduler visibility to overlap the MXU,
    # EUP (sigmoid/tanh) and VPU (cell update) work across iterations.
    unroll = True if Tc <= 16 else 8
    h, c = lax.fori_loop(0, Tc, step, (h_ref[...], c_ref[...]), unroll=unroll)

    h_ref[...] = h
    c_ref[...] = c


def batch_rnn_forward(x, w_ih, w_hh, *, time_chunk=128):
    """BatchRNN.forward for the default config (uni-dir LSTM, bias=False).

    x:    (T, N, D) float32  (sequence-first, like nn.LSTM batch_first=False)
    w_ih: (4H, D)   PyTorch weight_ih_l0 layout
    w_hh: (4H, H)   PyTorch weight_hh_l0 layout
    returns (T, N, H)
    """
    T, N, D = x.shape
    H = w_hh.shape[1]
    assert w_ih.shape == (4 * H, D)

    wih_t = jnp.asarray(w_ih).T  # (D, 4H)
    whh_t = jnp.asarray(w_hh).T  # (H, 4H)

    # --- pad batch to a multiple of 8 sublanes, time to a multiple of chunk ---
    N_pad = _round_up(N, 8)
    Tc = min(T, time_chunk)
    T_pad = _round_up(T, Tc)
    if (T_pad, N_pad) != (T, N):
        x = jnp.pad(x, ((0, T_pad - T), (0, N_pad - N), (0, 0)))

    # ------------------- Phase 1: hoisted input projection -------------------
    M = T_pad * N_pad
    x2d = x.reshape(M, D)
    tm = 256 if M >= 256 else _round_up(M, 8)
    M_pad = _round_up(M, tm)
    if M_pad != M:
        x2d = jnp.pad(x2d, ((0, M_pad - M), (0, 0)))

    gx2d = pl.pallas_call(
        _proj_kernel,
        out_shape=jax.ShapeDtypeStruct((M_pad, 4 * H), jnp.float32),
        grid_spec=pltpu.PrefetchScalarGridSpec(
            num_scalar_prefetch=0,
            grid=(M_pad // tm,),
            in_specs=[
                pl.BlockSpec((tm, D), lambda m: (m, 0)),
                pl.BlockSpec((D, 4 * H), lambda m: (0, 0)),
            ],
            out_specs=pl.BlockSpec((tm, 4 * H), lambda m: (m, 0)),
        ),
        compiler_params=pltpu.CompilerParams(
            dimension_semantics=("parallel",)),
    )(x2d, wih_t)

    gx = gx2d[:M].reshape(T_pad, N_pad, 4 * H)

    # ------------------- Phase 2: chunked time recurrence --------------------
    out = pl.pallas_call(
        _lstm_recurrence_kernel,
        out_shape=jax.ShapeDtypeStruct((T_pad, N_pad, H), x.dtype),
        grid_spec=pltpu.PrefetchScalarGridSpec(
            num_scalar_prefetch=0,
            grid=(T_pad // Tc,),
            in_specs=[
                pl.BlockSpec((Tc, N_pad, 4 * H), lambda c: (c, 0, 0)),
                pl.BlockSpec((H, 4 * H), lambda c: (0, 0)),
            ],
            out_specs=pl.BlockSpec((Tc, N_pad, H), lambda c: (c, 0, 0)),
            scratch_shapes=[
                pltpu.VMEM((N_pad, H), jnp.float32),  # h carry
                pltpu.VMEM((N_pad, H), jnp.float32),  # c carry
            ],
        ),
        compiler_params=pltpu.CompilerParams(
            dimension_semantics=("arbitrary",)),  # recurrence: never parallel
    )(gx, whh_t)

    return out[:T, :N]


def _lstm_reference(x, w_ih, w_hh):
    """Pure-JAX reference (lax.scan) for correctness checking."""
    T, N, D = x.shape
    H = w_hh.shape[1]

    def step(carry, x_t):
        h, c = carry
        gates = x_t @ w_ih.T + h @ w_hh.T
        i = jax.nn.sigmoid(gates[:, 0 * H:1 * H])
        f = jax.nn.sigmoid(gates[:, 1 * H:2 * H])
        g = jnp.tanh(gates[:, 2 * H:3 * H])
        o = jax.nn.sigmoid(gates[:, 3 * H:4 * H])
        c = f * c + i * g
        h = o * jnp.tanh(c)
        return (h, c), h

    init = (jnp.zeros((N, H), jnp.float32), jnp.zeros((N, H), jnp.float32))
    _, ys = lax.scan(step, init, x)
    return ys


if __name__ == "__main__":
    # Small shapes consistent with the module: seq T=8, batch N=4,
    # input_size D=32, hidden_size H=32.
    T, N, D, H = 8, 4, 32, 32

    key = jax.random.PRNGKey(0)
    kx, kih, khh = jax.random.split(key, 3)

    x = jax.random.normal(kx, (T, N, D), dtype=jnp.float32)

    # PyTorch nn.LSTM init: uniform(-1/sqrt(H), 1/sqrt(H))
    bound = 1.0 / np.sqrt(H)
    w_ih = jax.random.uniform(kih, (4 * H, D), jnp.float32, -bound, bound)
    w_hh = jax.random.uniform(khh, (4 * H, H), jnp.float32, -bound, bound)

    out = batch_rnn_forward(x, w_ih, w_hh)
    out = jax.block_until_ready(out)

    ref = _lstm_reference(x, w_ih, w_hh)
    np.testing.assert_allclose(np.asarray(out), np.asarray(ref),
                               rtol=2e-5, atol=2e-5)

    print("KERNEL_OK")
</pallas_src>

<mosaic_0001>
module attributes {stable_mosaic.version = 11 : i64} {
  func.func @_proj_kernel(%arg0: i32, %arg1: memref<64x32xf32, #tpu.memory_space<vmem>>, %arg2: memref<32x128xf32, #tpu.memory_space<vmem>>, %arg3: memref<64x128xf32, #tpu.memory_space<vmem>>) attributes {dimension_semantics = [#tpu.dimension_semantics<parallel>], iteration_bounds = array<i64: 1>, scalar_prefetch = 0 : i64, scratch_operands = 0 : i64, tpu.core_type = #tpu.core_type<tc>, window_params = [{transform_indices = @transform_0, window_bounds = array<i64: 64, 32>}, {pipeline_mode = #tpu.pipeline_mode<synchronous>, transform_indices = @transform_1, window_bounds = array<i64: 32, 128>}, {transform_indices = @transform_2, window_bounds = array<i64: 64, 128>}]} {
    %c0 = arith.constant 0 : index
    %c0_0 = arith.constant 0 : index
    %0 = vector.load %arg1[%c0, %c0_0] : memref<64x32xf32, #tpu.memory_space<vmem>>, vector<64x32xf32>
    %c0_1 = arith.constant 0 : index
    %c0_2 = arith.constant 0 : index
    %1 = vector.load %arg2[%c0_1, %c0_2] : memref<32x128xf32, #tpu.memory_space<vmem>>, vector<32x128xf32>
    %cst = arith.constant dense<0.000000e+00> : vector<64x128xf32>
    %2 = tpu.matmul %0, %1, %cst {dimension_numbers = #tpu.dot_dimension_numbers<[1], [0], [0], [1], [0, 0, 1, 1], [], []>} : vector<64x32xf32>, vector<32x128xf32>, vector<64x128xf32> -> vector<64x128xf32>
    %c0_3 = arith.constant 0 : index
    %c0_4 = arith.constant 0 : index
    %3 = vector.load %arg3[%c0_3, %c0_4] : memref<64x128xf32, #tpu.memory_space<vmem>>, vector<64x128xf32>
    tpu.vector_store %arg3[%c0_3, %c0_4], %2 {strides = array<i32>} : memref<64x128xf32, #tpu.memory_space<vmem>>, vector<64x128xf32>,
    return
  }
  func.func @transform_0(%arg0: i32) -> (i32, i32) {
    %c0_i32 = arith.constant 0 : i32
    %c0_i32_0 = arith.constant 0 : i32
    return %arg0, %c0_i32 : i32, i32
  }
  func.func @transform_1(%arg0: i32) -> (i32, i32) {
    %c0_i32 = arith.constant 0 : i32
    %c0_i32_0 = arith.constant 0 : i32
    %c0_i32_1 = arith.constant 0 : i32
    return %c0_i32, %c0_i32_0 : i32, i32
  }
  func.func @transform_2(%arg0: i32) -> (i32, i32) {
    %c0_i32 = arith.constant 0 : i32
    %c0_i32_0 = arith.constant 0 : i32
    return %arg0, %c0_i32 : i32, i32
  }
}

</mosaic_0001>

<bundles_post_ra>
// kernel: tpu_custom_call.1
= control target key start
LH: loop header
LB: loop body
LE: loop exit
PB: predicated region body
PF: predicated region fallthrough
CT: control target
= control target key end

     0   :  { %s316_s0 = inlined_call_operand.vmem [shape: f32[64,32], index: 0, kind: input, shape index: {}]   ;;  %s317_s1 = inlined_call_operand.vmem [shape: f32[32,128], index: 1, kind: input, shape index: {}]   ;;  %s318_s2 = inlined_call_operand.hbm [shape: f32[64,128], index: 2, kind: output, shape index: {}]  }
   0x1   :  { %v23_v0 = vld [vmem:[%s317_s1 + $0x18] sm:$0xff]  ;;  %v22_v1 = vld [vmem:[%s317_s1 + $0x10] sm:$0xff]  ;;  %v21_v2 = vld [vmem:[%s317_s1 + $0x8] sm:$0xff] }
   0x2   :  { %198 = vmatprep.subr.mxu0 %v23_v0  ;;  %218 = vmatprep.subr.mxu1 %v23_v0  ;;  %v20_v3 = vld [vmem:[%s317_s1] sm:$0xff] }
   0x3   :  { %199 = vmatpush3.msra.mxu0 %v23_v0  ;;  %222 = vmatpush3.msra.mxu1 %v23_v0 }
   0x4   :  { %200 = vmatprep.subr.mxu0 %v22_v1  ;;  %219 = vmatprep.subr.mxu1 %v22_v1 }
   0x5   :  { %201 = vmatpush3.msra.mxu0 %v22_v1  ;;  %223 = vmatpush3.msra.mxu1 %v22_v1 }
   0x6   :  { %7 = vsyncpa [#allocation3], 0  ;;  %202 = vmatprep.subr.mxu0 %v21_v2  ;;  %220 = vmatprep.subr.mxu1 %v21_v2  ;;  %v12_v4 = vld [vmem:[%s316_s0] sm:$0xff]  ;;  %vm24_vm0 = vcmask 261120   ;;  %v13_v6 = vld [vmem:[%s316_s0 + $0x8] sm:$0xff]  ;;  %s251_s4 = smov [#allocation2]  }
   0x7   :  { %203 = vmatpush3.msra.mxu0 %v21_v2  ;;  %224 = vmatpush3.msra.mxu1 %v21_v2  ;;  %v16_v5 = vld [vmem:[%s316_s0 + $0x20] sm:$0xff]  ;;  %v17_v7 = vld [vmem:[%s316_s0 + $0x28] sm:$0xff]  ;;  %v14_v8 = vld [vmem:[%s316_s0 + $0x10] sm:$0xff]  ;;  %s167_s5 = sshll.u32 %s251_s4, 4  ;;  %s168_s5 = int_to_ptr.vmem [resolvable:$true] %s167_s5 }
   0x8   :  { %204 = vmatprep.subr.mxu0 %v20_v3  ;;  %221 = vmatprep.subr.mxu1 %v20_v3  ;;  %v18_v9 = vld [vmem:[%s316_s0 + $0x30] sm:$0xff]  ;;  %v15_v10 = vld [vmem:[%s316_s0 + $0x18] sm:$0xff]  ;;  %p234_p1 = scmp.lt.s32.totalorder %s168_s5, %s168_s5 }
   0x9   :  { %205 = vmatpush3.msra.mxu0 %v20_v3  ;;  %225 = vmatpush3.msra.mxu1 %v20_v3  ;;  %v19_v11 = vld [vmem:[%s316_s0 + $0x38] sm:$0xff]  ;;  %s229_s0 = scalar_lea.vmem %s168_s5, 1024 }
   0xa   :  { %206 = vmatprep.mubr.msk.f32.mxu0 %vm24_vm0, %v12_v4  ;;  %212 = vmatprep.mubr.msk.f32.mxu1 %vm24_vm0, %v16_v5  ;;  %p230_p0 = scmp.ne.s32.totalorder %s168_s5, %s229_s0  ;;  %p235_p2 = scmp.lt.s32.totalorder %s229_s0, %s229_s0 }
   0xb   :  { %207 = vmatmul.mubr.msk.f32.vlgmr.msra.gmra.mxu0 %vm24_vm0, %v13_v6  ;;  %213 = vmatmul.mubr.msk.f32.vlgmr.msra.gmra.mxu1 %vm24_vm0, %v17_v7 }
   0xc   :  { %209 = vmatprep.mubr.msk.f32.mxu0 %vm24_vm0, %v14_v8  ;;  %215 = vmatprep.mubr.msk.f32.mxu1 %vm24_vm0, %v18_v9  ;;  %p236_p3 = por %p235_p2, %p234_p1 }
   0xe   :  { %p237_p4 = pnand %p236_p3, %p230_p0 }
   0xf   :  { %210 = vmatmul.mubr.msk.f32.gmra.mxu0 %vm24_vm0, %v15_v10  ;;  %216 = vmatmul.mubr.msk.f32.gmra.mxu1 %vm24_vm0, %v19_v11 }
  0xcb   :  { %v208_v12 = vpop.f32.mrf.mxu0  ;;  %v214_v13 = vpop.f32.mrf.mxu1 }
  0xcc   :  { %155 = vst [vmem:[#allocation2 + $0x8] sm:$0xff] %v208_v12  ;;  %159 = vst [vmem:[#allocation2 + $0x28] sm:$0xff] %v214_v13 }
  0xcd   :  { %v115_v14 = vpop.f32.mrf.mxu0  ;;  %v135_v15 = vpop.f32.mrf.mxu1 }
  0xce   :  { %154 = vst [vmem:[#allocation2] sm:$0xff] %v115_v14  ;;  %158 = vst [vmem:[#allocation2 + $0x20] sm:$0xff] %v135_v15 }
  0xcf   :  { %v211_v16 = vpop.f32.mrf.mxu0  ;;  %v217_v17 = vpop.f32.mrf.mxu1 }
  0xd0   :  { %157 = vst [vmem:[#allocation2 + $0x18] sm:$0xff] %v211_v16  ;;  %161 = vst [vmem:[#allocation2 + $0x38] sm:$0xff] %v217_v17 }
  0xd1   :  { %v125_v18 = vpop.f32.mrf.mxu0  ;;  %v145_v19 = vpop.f32.mrf.mxu1 }
  0xd2   :  { %156 = vst [vmem:[#allocation2 + $0x10] sm:$0xff] %v125_v18  ;;  %160 = vst [vmem:[#allocation2 + $0x30] sm:$0xff] %v145_v19 }
  0xd3   :  { %240 = shalt.err (!%p237_p4)
}
  0xd4   :  { %s252_s6 = smov 128   ;;  %s253_s7 = smov 8  }
  0xd5   :  { %173 = dma.vmem_to_hbm [thread:$0]  %s168_s5, 1024, %s318_s2, [#allocation3], %s252_s6, %s252_s6, %s253_s7  }
  0xd6   :  { %249 = dma.done.wait [#allocation3], 1024  }
  0xd7   :  { %250 = vsyncadd [#allocation3], 4294966272 }
  0xd8   :  { %177 = vsyncpa [#allocation3], 1 }

</bundles_post_ra>
